<compile_context>
chip_gen: v6e
topology: v6e:2x2x1
jax: 0.10.0
libtpu: 0.0.40
codegen_flags: <defaults>
</compile_context>

<pallas_src>
import jax
import jax.numpy as jnp
from jax.experimental import pallas as pl
from jax.experimental.pallas import tpu as pltpu

_LANES = 128
_SUBLANES = 8
_MAX_BLK_ROWS = 512      # 512 x 128 x 4B = 256 KiB per input block
_N_SPLIT = 2             # leading "parallel" grid axis (v7x 2 TCs / megacore)


def _cdiv(a, b):
    return -(-a // b)


def _round_up(x, m):
    return _cdiv(x, m) * m


def _distance_kernel(a_ref, b_ref, o_ref, acc_ref):
    # acc_ref: (8, 128) f32 running partial sums for this core's slice.
    @pl.when(pl.program_id(1) == 0)
    def _():
        acc_ref[...] = jnp.zeros_like(acc_ref)

    d = a_ref[...].astype(jnp.float32) - b_ref[...].astype(jnp.float32)
    sq = d * d
    # (blk_rows, 128) -> (blk_rows//8, 8, 128) is a free retiling of the same
    # (sublane, lane) layout; summing the leading axis is pure VPU work, so the
    # kernel stays DMA-bound even with large blocks.
    acc_ref[...] += jnp.sum(sq.reshape(-1, _SUBLANES, _LANES), axis=0)

    # Emit this core's (8, 128) partial sum on its last step; the cross-lane
    # reduce + sqrt is a negligible epilogue done in the wrapper.
    @pl.when(pl.program_id(1) == pl.num_programs(1) - 1)
    def _():
        o_ref[...] = acc_ref[...]


@jax.jit
def distance_loss(cam1, cam2):
    """Returns -sqrt(sum((cam1 - cam2)**2)) as a float32 scalar."""
    a = jnp.ravel(cam1)
    b = jnp.ravel(cam2)
    n = a.shape[0]

    # Tile geometry: rows of 128 lanes; block rows sized to amortize the
    # ~0.35 us per-grid-step pipeline overhead, clamped for small inputs.
    rows_needed = _cdiv(n, _LANES)
    blk_rows = min(_MAX_BLK_ROWS,
                   _round_up(_cdiv(rows_needed, _N_SPLIT), _SUBLANES))
    blocks_per_core = _cdiv(rows_needed, _N_SPLIT * blk_rows)
    total_rows = _N_SPLIT * blocks_per_core * blk_rows
    padded = total_rows * _LANES

    if padded != n:
        # Zero padding contributes 0 to the sum of squared differences.
        # TODO(synk): for huge, non-aligned inputs replace this pad copy with
        # in-kernel masking of the last block (iota vs n via scalar prefetch)
        # to avoid an extra pass over HBM.
        a = jnp.pad(a, (0, padded - n))
        b = jnp.pad(b, (0, padded - n))

    a2 = a.reshape(total_rows, _LANES)
    b2 = b.reshape(total_rows, _LANES)

    in_map = lambda c, k: (c * blocks_per_core + k, 0)

    partial = pl.pallas_call(
        _distance_kernel,
        out_shape=jax.ShapeDtypeStruct((_N_SPLIT * _SUBLANES, _LANES),
                                       jnp.float32),
        grid_spec=pltpu.PrefetchScalarGridSpec(
            num_scalar_prefetch=0,
            grid=(_N_SPLIT, blocks_per_core),
            in_specs=[
                pl.BlockSpec((blk_rows, _LANES), in_map),
                pl.BlockSpec((blk_rows, _LANES), in_map),
            ],
            out_specs=pl.BlockSpec((_SUBLANES, _LANES), lambda c, k: (c, 0)),
            scratch_shapes=[pltpu.VMEM((_SUBLANES, _LANES), jnp.float32)],
        ),
        compiler_params=pltpu.CompilerParams(
            dimension_semantics=("parallel", "arbitrary"),
        ),
    )(a2, b2)

    # Tiny epilogue: combine the per-core (8, 128) partial sums and take -sqrt.
    return -jnp.sqrt(jnp.sum(partial))


if __name__ == "__main__":
    key = jax.random.PRNGKey(0)
    k1, k2 = jax.random.split(key)
    cam1 = jax.random.normal(k1, (2, 4, 16, 16), dtype=jnp.float32)
    cam2 = jax.random.normal(k2, (2, 4, 16, 16), dtype=jnp.float32)

    loss = jax.block_until_ready(distance_loss(cam1, cam2))

    # Reference check in plain JAX.
    ref = -jnp.sqrt(jnp.sum((cam1.ravel() - cam2.ravel()) ** 2))
    assert jnp.allclose(loss, ref, rtol=1e-5, atol=1e-5), (loss, ref)

    print("KERNEL_OK")
</pallas_src>

<mosaic_0001>
module attributes {stable_mosaic.version = 11 : i64} {
  func.func @_distance_kernel(%arg0: i32, %arg1: i32, %arg2: memref<8x128xf32, #tpu.memory_space<vmem>>, %arg3: memref<8x128xf32, #tpu.memory_space<vmem>>, %arg4: memref<8x128xf32, #tpu.memory_space<vmem>>, %arg5: memref<8x128xf32, #tpu.memory_space<vmem>>) attributes {dimension_semantics = [#tpu.dimension_semantics<parallel>, #tpu.dimension_semantics<arbitrary>], iteration_bounds = array<i64: 2, 1>, scalar_prefetch = 0 : i64, scratch_operands = 1 : i64, tpu.core_type = #tpu.core_type<tc>, window_params = [{transform_indices = @transform_0, window_bounds = array<i64: 8, 128>}, {transform_indices = @transform_1, window_bounds = array<i64: 8, 128>}, {transform_indices = @transform_2, window_bounds = array<i64: 8, 128>}]} {
    %c0_i32 = arith.constant 0 : i32
    %0 = arith.cmpi eq, %arg1, %c0_i32 : i32
    %1 = arith.extui %0 : i1 to i32
    %c0_i32_0 = arith.constant 0 : i32
    %2 = arith.cmpi ne, %1, %c0_i32_0 : i32
    scf.if %2 {
      %cst_10 = arith.constant 0.000000e+00 : f32
      %15 = vector.broadcast %cst_10 : f32 to vector<8x128xf32>
      %c0_11 = arith.constant 0 : index
      %c0_12 = arith.constant 0 : index
      %16 = vector.load %arg5[%c0_11, %c0_12] : memref<8x128xf32, #tpu.memory_space<vmem>>, vector<8x128xf32>
      tpu.vector_store %arg5[%c0_11, %c0_12], %15 {strides = array<i32>} : memref<8x128xf32, #tpu.memory_space<vmem>>, vector<8x128xf32>,
    } else {
    }
    %c0 = arith.constant 0 : index
    %c0_1 = arith.constant 0 : index
    %3 = vector.load %arg2[%c0, %c0_1] : memref<8x128xf32, #tpu.memory_space<vmem>>, vector<8x128xf32>
    %c0_2 = arith.constant 0 : index
    %c0_3 = arith.constant 0 : index
    %4 = vector.load %arg3[%c0_2, %c0_3] : memref<8x128xf32, #tpu.memory_space<vmem>>, vector<8x128xf32>
    %5 = arith.subf %3, %4 : vector<8x128xf32>
    %6 = arith.mulf %5, %5 : vector<8x128xf32>
    %c0_4 = arith.constant 0 : index
    %c0_5 = arith.constant 0 : index
    %7 = vector.load %arg5[%c0_4, %c0_5] : memref<8x128xf32, #tpu.memory_space<vmem>>, vector<8x128xf32>
    %8 = vector.shape_cast %6 : vector<8x128xf32> to vector<1x8x128xf32>
    %cst = arith.constant dense<0.000000e+00> : vector<8x128xf32>
    %9 = vector.multi_reduction <add>, %8, %cst [0] : vector<1x8x128xf32> to vector<8x128xf32>
    %10 = arith.addf %7, %9 : vector<8x128xf32>
    %c0_6 = arith.constant 0 : index
    %c0_7 = arith.constant 0 : index
    %11 = vector.load %arg5[%c0_6, %c0_7] : memref<8x128xf32, #tpu.memory_space<vmem>>, vector<8x128xf32>
    tpu.vector_store %arg5[%c0_6, %c0_7], %10 {strides = array<i32>} : memref<8x128xf32, #tpu.memory_space<vmem>>, vector<8x128xf32>,
    %c0_i32_8 = arith.constant 0 : i32
    %12 = arith.cmpi eq, %arg1, %c0_i32_8 : i32
    %13 = arith.extui %12 : i1 to i32
    %c0_i32_9 = arith.constant 0 : i32
    %14 = arith.cmpi ne, %13, %c0_i32_9 : i32
    scf.if %14 {
      %c0_10 = arith.constant 0 : index
      %c0_11 = arith.constant 0 : index
      %15 = vector.load %arg5[%c0_10, %c0_11] : memref<8x128xf32, #tpu.memory_space<vmem>>, vector<8x128xf32>
      %c0_12 = arith.constant 0 : index
      %c0_13 = arith.constant 0 : index
      %16 = vector.load %arg4[%c0_12, %c0_13] : memref<8x128xf32, #tpu.memory_space<vmem>>, vector<8x128xf32>
      tpu.vector_store %arg4[%c0_12, %c0_13], %15 {strides = array<i32>} : memref<8x128xf32, #tpu.memory_space<vmem>>, vector<8x128xf32>,
    } else {
    }
    return
  }
  func.func @transform_0(%arg0: i32, %arg1: i32) -> (i32, i32) {
    %c1_i32 = arith.constant 1 : i32
    %0 = arith.muli %arg0, %c1_i32 : i32
    %1 = arith.addi %0, %arg1 : i32
    %c0_i32 = arith.constant 0 : i32
    %c0_i32_0 = arith.constant 0 : i32
    return %1, %c0_i32 : i32, i32
  }
  func.func @transform_1(%arg0: i32, %arg1: i32) -> (i32, i32) {
    %c1_i32 = arith.constant 1 : i32
    %0 = arith.muli %arg0, %c1_i32 : i32
    %1 = arith.addi %0, %arg1 : i32
    %c0_i32 = arith.constant 0 : i32
    %c0_i32_0 = arith.constant 0 : i32
    return %1, %c0_i32 : i32, i32
  }
  func.func @transform_2(%arg0: i32, %arg1: i32) -> (i32, i32) {
    %c0_i32 = arith.constant 0 : i32
    %c0_i32_0 = arith.constant 0 : i32
    return %arg0, %c0_i32 : i32, i32
  }
}

</mosaic_0001>

<bundles_post_ra>
// kernel: distance_loss.1
= control target key start
LH: loop header
LB: loop body
LE: loop exit
PB: predicated region body
PF: predicated region fallthrough
CT: control target
= control target key end

     0   :  { %s346_s9 = smov 0   ;;  %s348_s10 = smov 0   ;;  %s370_s0 = inlined_call_operand.vmem [shape: f32[16,128], index: 0, kind: input, shape index: {}]   ;;  %s371_s1 = inlined_call_operand.vmem [shape: f32[16,128], index: 1, kind: input, shape index: {}]   ;;  %s372_s2 = inlined_call_operand.vmem [shape: f32[16,128], index: 2, kind: output, shape index: {}]  }
   0x1   :  { %s350_s11 = smov 0  }
   0x2 LB: > { %s24_s12 = sadd.s32 1, %s325_s10  ;;  %p277_p0 = scmp.ge.s32.totalorder %s329_s11, 1  ;;  %s329_s11 = sphi %s350_s11, %s12_s11   ;;  %s325_s10 = sphi %s348_s10, %s374_s10   ;;  %s321_s9 = sphi %s346_s9, %s373_s9  }
   0x3   : > { %p26_p1 = scmp.ge.s32.totalorder %s24_s12, 2  ;;  %p140_p2 = scmp.lt.s32.totalorder %s329_s11, 3 }
   0x5   : > { %s376_s12 = smov (%p26_p1, %s24_s12), 0  ;;  %p141_p3 = pnand %p277_p0, %p140_p2 }
   0x6   : > { %p167_p4 = scmp.lt.s32.totalorder (!%p141_p3), %s321_s9, 1 }
   0x7   : > { %144 = sbr.rel (%p141_p3) target bundleno = 22 (0x16), region = 28 }
   0xc   : > { %s378_s9 = smov (!%p167_p4, %s321_s9), 1 }
   0xd   : > { %s278_s13 = sshll.u32 %s378_s9, 3 }
   0xe   : > { %s170_s16 = scalar_lea.vmem %s370_s0, %s278_s13  ;;  %s176_s19 = scalar_lea.vmem %s371_s1, %s278_s13 }
   0xf   : > { %v187_v0 = vld [vmem:[%s170_s16] sm:$0xff]  ;;  %s181_s22 = scalar_lea.vmem %s372_s2, %s278_s13 }
  0x10   : > { %v188_v1 = vld [vmem:[%s176_s19] sm:$0xff] }
  0x11   : > { %v189_v2 = vsub.f32 %v187_v0, %v188_v1 }
  0x13   : > { %v190_v3 = vmul.f32 %v189_v2, %v189_v2 }
  0x15   : > { %199 = vst [vmem:[%s181_s22] sm:$0xff] %v190_v3 }
  0x16 PF: > { %s12_s11 = sadd.s32 1, %s329_s11   ;;  %s373_s9 = smov %s325_s10 }
  0x17   : > { %p9_p5 = scmp.ge.s32.totalorder %s12_s11, 4   ;;  %s374_s10 = smov %s376_s12 }
  0x19   :  { %11 = sbr.rel (!%p9_p5) target bundleno = 2 (0x2), region = 69 }

</bundles_post_ra>
